<compile_context>
chip_gen: v7x
topology: tpu7x:2x2x1
jax: 0.10.0
libtpu: 0.0.40
codegen_flags: <defaults>
</compile_context>

<pallas_src>
import math
from functools import partial

import jax
import jax.numpy as jnp
from jax.experimental import pallas as pl
from jax.experimental.pallas import tpu as pltpu  # noqa: F401  (TPU backend assumed)


# ----------------------------------------------------------------------------
# helpers
# ----------------------------------------------------------------------------
def _full_spec(shape):
    """BlockSpec covering the whole array (grid=(1,))."""
    nd = len(shape)
    return pl.BlockSpec(shape, lambda i, _nd=nd: (0,) * _nd)


# ----------------------------------------------------------------------------
# single fused kernel: Linear -> BN -> GELU -> Linear -> BN -> GELU -> [zloc|zsca]
# ----------------------------------------------------------------------------
def _qc_kernel(x_ref, w1_ref, b1_ref, g1_ref, bt1_ref,
               w2_ref, b2_ref, g2_ref, bt2_ref,
               wz_ref, bz_ref, o_ref, *, out_dim):
    def bn(y, g, bt):
        # PyTorch BatchNorm1d forward (training): batch mean, biased variance, eps=1e-5
        mean = jnp.mean(y, axis=0, keepdims=True)
        var = jnp.mean((y - mean) ** 2, axis=0, keepdims=True)
        return (y - mean) * jax.lax.rsqrt(var + 1e-5) * g + bt

    def gelu(y):
        # exact (erf) GELU, PyTorch nn.GELU default
        return 0.5 * y * (1.0 + jax.lax.erf(y * 0.7071067811865476))

    # layer 1: in_dim -> hidden
    h = jnp.dot(x_ref[...], w1_ref[...], preferred_element_type=jnp.float32) + b1_ref[...]
    h = gelu(bn(h, g1_ref[...], bt1_ref[...]))

    # layer 2: hidden -> out_dim
    h = jnp.dot(h, w2_ref[...], preferred_element_type=jnp.float32) + b2_ref[...]
    h = gelu(bn(h, g2_ref[...], bt2_ref[...]))

    # fused z_loc | z_sca head: out_dim -> 2*out_dim
    y = jnp.dot(h, wz_ref[...], preferred_element_type=jnp.float32) + bz_ref[...]

    # Softplus (beta=1, threshold=20) only on the z_sca half (cols >= out_dim).
    # Column-mask instead of slice+concat keeps the vregs lane-contiguous.
    col = jax.lax.broadcasted_iota(jnp.int32, y.shape, 1)
    sp = jnp.where(y > 20.0, y, jnp.log1p(jnp.exp(jnp.minimum(y, 20.0))))
    o_ref[...] = jnp.where(col >= out_dim, sp, y)


def qc_inference_mlp_forward(params, x):
    """Returns (c_mu, c_sca), each (B, out_dim)."""
    B, in_dim = x.shape
    hidden = params["w1"].shape[1]
    out_dim = params["w2"].shape[1]

    out = pl.pallas_call(
        partial(_qc_kernel, out_dim=out_dim),
        out_shape=jax.ShapeDtypeStruct((B, 2 * out_dim), jnp.float32),
        grid=(1,),
        in_specs=[
            _full_spec((B, in_dim)),
            _full_spec((in_dim, hidden)),
            _full_spec((1, hidden)),
            _full_spec((1, hidden)),
            _full_spec((1, hidden)),
            _full_spec((hidden, out_dim)),
            _full_spec((1, out_dim)),
            _full_spec((1, out_dim)),
            _full_spec((1, out_dim)),
            _full_spec((out_dim, 2 * out_dim)),
            _full_spec((1, 2 * out_dim)),
        ],
        out_specs=_full_spec((B, 2 * out_dim)),
    )(
        x,
        params["w1"], params["b1"], params["g1"], params["bt1"],
        params["w2"], params["b2"], params["g2"], params["bt2"],
        params["wz"], params["bz"],
    )
    return out[:, :out_dim], out[:, out_dim:]


# ----------------------------------------------------------------------------
# pure-JAX reference (same math, no Pallas) for correctness checking
# ----------------------------------------------------------------------------
def qc_inference_mlp_reference(params, x):
    def bn(y, g, bt):
        mean = jnp.mean(y, axis=0, keepdims=True)
        var = jnp.mean((y - mean) ** 2, axis=0, keepdims=True)
        return (y - mean) * jax.lax.rsqrt(var + 1e-5) * g + bt

    def gelu(y):
        return 0.5 * y * (1.0 + jax.lax.erf(y * 0.7071067811865476))

    out_dim = params["w2"].shape[1]
    h = gelu(bn(x @ params["w1"] + params["b1"], params["g1"], params["bt1"]))
    h = gelu(bn(h @ params["w2"] + params["b2"], params["g2"], params["bt2"]))
    y = h @ params["wz"] + params["bz"]
    c_mu = y[:, :out_dim]
    s = y[:, out_dim:]
    c_sca = jnp.where(s > 20.0, s, jnp.log1p(jnp.exp(jnp.minimum(s, 20.0))))
    return c_mu, c_sca


# ----------------------------------------------------------------------------
# deterministic parameter init (PyTorch nn.Linear default: U(-1/sqrt(fan_in), +))
# ----------------------------------------------------------------------------
def _init_linear(key, fan_in, fan_out):
    k1, k2 = jax.random.split(key)
    bound = 1.0 / math.sqrt(fan_in)
    w = jax.random.uniform(k1, (fan_in, fan_out), minval=-bound, maxval=bound, dtype=jnp.float32)
    b = jax.random.uniform(k2, (1, fan_out), minval=-bound, maxval=bound, dtype=jnp.float32)
    return w, b


def init_params(key, in_dim, out_dim, hidden=1024):
    ks = jax.random.split(key, 4)
    p = {}
    p["w1"], p["b1"] = _init_linear(ks[0], in_dim, hidden)
    p["g1"] = jnp.ones((1, hidden), jnp.float32)
    p["bt1"] = jnp.zeros((1, hidden), jnp.float32)
    p["w2"], p["b2"] = _init_linear(ks[1], hidden, out_dim)
    p["g2"] = jnp.ones((1, out_dim), jnp.float32)
    p["bt2"] = jnp.zeros((1, out_dim), jnp.float32)
    # fused z_loc | z_sca head
    wl, bl = _init_linear(ks[2], out_dim, out_dim)
    ws, bs = _init_linear(ks[3], out_dim, out_dim)
    p["wz"] = jnp.concatenate([wl, ws], axis=1)      # (out_dim, 2*out_dim)
    p["bz"] = jnp.concatenate([bl, bs], axis=1)      # (1, 2*out_dim)
    return p


# ----------------------------------------------------------------------------
if __name__ == "__main__":
    in_dim = 8       # e.g. number of classes (label embedding identity rows)
    out_dim = 32     # z_dim
    hidden = 1024    # Qc_inference_mlp default hidden_dim=[1024]
    batch = 8

    key = jax.random.PRNGKey(0)
    kp, kx = jax.random.split(key)

    params = init_params(kp, in_dim, out_dim, hidden=hidden)
    x = jax.random.normal(kx, (batch, in_dim), dtype=jnp.float32)

    fwd = jax.jit(qc_inference_mlp_forward)
    c_mu, c_sca = fwd(params, x)
    jax.block_until_ready((c_mu, c_sca))

    # correctness vs pure-JAX reference
    r_mu, r_sca = qc_inference_mlp_reference(params, x)
    assert c_mu.shape == (batch, out_dim)
    assert c_sca.shape == (batch, out_dim)
    assert bool(jnp.all(jnp.isfinite(c_mu))), "c_mu has non-finite values"
    assert bool(jnp.all(jnp.isfinite(c_sca))), "c_sca has non-finite values"
    assert bool(jnp.all(c_sca >= 0.0)), "softplus output must be non-negative"
    assert bool(jnp.allclose(c_mu, r_mu, atol=1e-4, rtol=1e-4))
    assert bool(jnp.allclose(c_sca, r_sca, atol=1e-4, rtol=1e-4))

    print("KERNEL_OK")
</pallas_src>

<mosaic_0001>
module attributes {stable_mosaic.version = 11 : i64} {
  func.func @_qc_kernel(%arg0: i32, %arg1: memref<8x8xf32, #tpu.memory_space<vmem>>, %arg2: memref<8x1024xf32, #tpu.memory_space<vmem>>, %arg3: memref<1x1024xf32, #tpu.memory_space<vmem>>, %arg4: memref<1x1024xf32, #tpu.memory_space<vmem>>, %arg5: memref<1x1024xf32, #tpu.memory_space<vmem>>, %arg6: memref<1024x32xf32, #tpu.memory_space<vmem>>, %arg7: memref<1x32xf32, #tpu.memory_space<vmem>>, %arg8: memref<1x32xf32, #tpu.memory_space<vmem>>, %arg9: memref<1x32xf32, #tpu.memory_space<vmem>>, %arg10: memref<32x64xf32, #tpu.memory_space<vmem>>, %arg11: memref<1x64xf32, #tpu.memory_space<vmem>>, %arg12: memref<8x64xf32, #tpu.memory_space<vmem>>) attributes {dimension_semantics = [#tpu.dimension_semantics<arbitrary>], iteration_bounds = array<i64: 1>, scalar_prefetch = 0 : i64, scratch_operands = 0 : i64, tpu.core_type = #tpu.core_type<tc>, window_params = [{pipeline_mode = #tpu.pipeline_mode<synchronous>, transform_indices = @transform_0, window_bounds = array<i64: 8, 8>}, {pipeline_mode = #tpu.pipeline_mode<synchronous>, transform_indices = @transform_1, window_bounds = array<i64: 8, 1024>}, {pipeline_mode = #tpu.pipeline_mode<synchronous>, transform_indices = @transform_2, window_bounds = array<i64: 1, 1024>}, {pipeline_mode = #tpu.pipeline_mode<synchronous>, transform_indices = @transform_3, window_bounds = array<i64: 1, 1024>}, {pipeline_mode = #tpu.pipeline_mode<synchronous>, transform_indices = @transform_4, window_bounds = array<i64: 1, 1024>}, {pipeline_mode = #tpu.pipeline_mode<synchronous>, transform_indices = @transform_5, window_bounds = array<i64: 1024, 32>}, {pipeline_mode = #tpu.pipeline_mode<synchronous>, transform_indices = @transform_6, window_bounds = array<i64: 1, 32>}, {pipeline_mode = #tpu.pipeline_mode<synchronous>, transform_indices = @transform_7, window_bounds = array<i64: 1, 32>}, {pipeline_mode = #tpu.pipeline_mode<synchronous>, transform_indices = @transform_8, window_bounds = array<i64: 1, 32>}, {pipeline_mode = #tpu.pipeline_mode<synchronous>, transform_indices = @transform_9, window_bounds = array<i64: 32, 64>}, {pipeline_mode = #tpu.pipeline_mode<synchronous>, transform_indices = @transform_10, window_bounds = array<i64: 1, 64>}, {pipeline_mode = #tpu.pipeline_mode<synchronous>, transform_indices = @transform_11, window_bounds = array<i64: 8, 64>}]} {
    %c0 = arith.constant 0 : index
    %c0_0 = arith.constant 0 : index
    %0 = vector.load %arg1[%c0, %c0_0] : memref<8x8xf32, #tpu.memory_space<vmem>>, vector<8x8xf32>
    %c0_1 = arith.constant 0 : index
    %c0_2 = arith.constant 0 : index
    %1 = vector.load %arg2[%c0_1, %c0_2] : memref<8x1024xf32, #tpu.memory_space<vmem>>, vector<8x1024xf32>
    %cst = arith.constant dense<0.000000e+00> : vector<8x1024xf32>
    %2 = tpu.matmul %0, %1, %cst {dimension_numbers = #tpu.dot_dimension_numbers<[1], [0], [0], [1], [0, 0, 1, 1], [], []>} : vector<8x8xf32>, vector<8x1024xf32>, vector<8x1024xf32> -> vector<8x1024xf32>
    %c0_3 = arith.constant 0 : index
    %c0_4 = arith.constant 0 : index
    %3 = vector.load %arg3[%c0_3, %c0_4] : memref<1x1024xf32, #tpu.memory_space<vmem>>, vector<1x1024xf32>
    %4 = vector.broadcast %3 : vector<1x1024xf32> to vector<8x1024xf32>
    %5 = arith.addf %2, %4 : vector<8x1024xf32>
    %c0_5 = arith.constant 0 : index
    %c0_6 = arith.constant 0 : index
    %6 = vector.load %arg4[%c0_5, %c0_6] : memref<1x1024xf32, #tpu.memory_space<vmem>>, vector<1x1024xf32>
    %c0_7 = arith.constant 0 : index
    %c0_8 = arith.constant 0 : index
    %7 = vector.load %arg5[%c0_7, %c0_8] : memref<1x1024xf32, #tpu.memory_space<vmem>>, vector<1x1024xf32>
    %cst_9 = arith.constant dense<0.000000e+00> : vector<1024xf32>
    %8 = vector.multi_reduction <add>, %5, %cst_9 [0] : vector<8x1024xf32> to vector<1024xf32>
    %9 = vector.shape_cast %8 : vector<1024xf32> to vector<1x1024xf32>
    %cst_10 = arith.constant 8.000000e+00 : f32
    %10 = vector.broadcast %cst_10 : f32 to vector<1x1024xf32>
    %11 = arith.divf %9, %10 : vector<1x1024xf32>
    %12 = vector.broadcast %11 : vector<1x1024xf32> to vector<8x1024xf32>
    %13 = arith.subf %5, %12 : vector<8x1024xf32>
    %14 = arith.mulf %13, %13 : vector<8x1024xf32>
    %cst_11 = arith.constant dense<0.000000e+00> : vector<1024xf32>
    %15 = vector.multi_reduction <add>, %14, %cst_11 [0] : vector<8x1024xf32> to vector<1024xf32>
    %16 = vector.shape_cast %15 : vector<1024xf32> to vector<1x1024xf32>
    %cst_12 = arith.constant 8.000000e+00 : f32
    %17 = vector.broadcast %cst_12 : f32 to vector<1x1024xf32>
    %18 = arith.divf %16, %17 : vector<1x1024xf32>
    %19 = vector.broadcast %11 : vector<1x1024xf32> to vector<8x1024xf32>
    %20 = arith.subf %5, %19 : vector<8x1024xf32>
    %cst_13 = arith.constant 9.99999974E-6 : f32
    %21 = vector.broadcast %cst_13 : f32 to vector<1x1024xf32>
    %22 = arith.addf %18, %21 : vector<1x1024xf32>
    %23 = math.rsqrt %22 : vector<1x1024xf32>
    %24 = vector.broadcast %23 : vector<1x1024xf32> to vector<8x1024xf32>
    %25 = arith.mulf %20, %24 : vector<8x1024xf32>
    %26 = vector.broadcast %6 : vector<1x1024xf32> to vector<8x1024xf32>
    %27 = arith.mulf %25, %26 : vector<8x1024xf32>
    %28 = vector.broadcast %7 : vector<1x1024xf32> to vector<8x1024xf32>
    %29 = arith.addf %27, %28 : vector<8x1024xf32>
    %cst_14 = arith.constant 5.000000e-01 : f32
    %30 = vector.broadcast %cst_14 : f32 to vector<8x1024xf32>
    %31 = arith.mulf %30, %29 : vector<8x1024xf32>
    %cst_15 = arith.constant 0.707106769 : f32
    %32 = vector.broadcast %cst_15 : f32 to vector<8x1024xf32>
    %33 = arith.mulf %29, %32 : vector<8x1024xf32>
    %34 = math.erf %33 : vector<8x1024xf32>
    %cst_16 = arith.constant 1.000000e+00 : f32
    %35 = vector.broadcast %cst_16 : f32 to vector<8x1024xf32>
    %36 = arith.addf %35, %34 : vector<8x1024xf32>
    %37 = arith.mulf %31, %36 : vector<8x1024xf32>
    %c0_17 = arith.constant 0 : index
    %c0_18 = arith.constant 0 : index
    %38 = vector.load %arg6[%c0_17, %c0_18] : memref<1024x32xf32, #tpu.memory_space<vmem>>, vector<1024x32xf32>
    %cst_19 = arith.constant dense<0.000000e+00> : vector<8x32xf32>
    %39 = tpu.matmul %37, %38, %cst_19 {dimension_numbers = #tpu.dot_dimension_numbers<[1], [0], [0], [1], [0, 0, 1, 1], [], []>} : vector<8x1024xf32>, vector<1024x32xf32>, vector<8x32xf32> -> vector<8x32xf32>
    %c0_20 = arith.constant 0 : index
    %c0_21 = arith.constant 0 : index
    %40 = vector.load %arg7[%c0_20, %c0_21] : memref<1x32xf32, #tpu.memory_space<vmem>>, vector<1x32xf32>
    %41 = vector.broadcast %40 : vector<1x32xf32> to vector<8x32xf32>
    %42 = arith.addf %39, %41 : vector<8x32xf32>
    %c0_22 = arith.constant 0 : index
    %c0_23 = arith.constant 0 : index
    %43 = vector.load %arg8[%c0_22, %c0_23] : memref<1x32xf32, #tpu.memory_space<vmem>>, vector<1x32xf32>
    %c0_24 = arith.constant 0 : index
    %c0_25 = arith.constant 0 : index
    %44 = vector.load %arg9[%c0_24, %c0_25] : memref<1x32xf32, #tpu.memory_space<vmem>>, vector<1x32xf32>
    %cst_26 = arith.constant dense<0.000000e+00> : vector<32xf32>
    %45 = vector.multi_reduction <add>, %42, %cst_26 [0] : vector<8x32xf32> to vector<32xf32>
    %46 = vector.shape_cast %45 : vector<32xf32> to vector<1x32xf32>
    %cst_27 = arith.constant 8.000000e+00 : f32
    %47 = vector.broadcast %cst_27 : f32 to vector<1x32xf32>
    %48 = arith.divf %46, %47 : vector<1x32xf32>
    %49 = vector.broadcast %48 : vector<1x32xf32> to vector<8x32xf32>
    %50 = arith.subf %42, %49 : vector<8x32xf32>
    %51 = arith.mulf %50, %50 : vector<8x32xf32>
    %cst_28 = arith.constant dense<0.000000e+00> : vector<32xf32>
    %52 = vector.multi_reduction <add>, %51, %cst_28 [0] : vector<8x32xf32> to vector<32xf32>
    %53 = vector.shape_cast %52 : vector<32xf32> to vector<1x32xf32>
    %cst_29 = arith.constant 8.000000e+00 : f32
    %54 = vector.broadcast %cst_29 : f32 to vector<1x32xf32>
    %55 = arith.divf %53, %54 : vector<1x32xf32>
    %56 = vector.broadcast %48 : vector<1x32xf32> to vector<8x32xf32>
    %57 = arith.subf %42, %56 : vector<8x32xf32>
    %cst_30 = arith.constant 9.99999974E-6 : f32
    %58 = vector.broadcast %cst_30 : f32 to vector<1x32xf32>
    %59 = arith.addf %55, %58 : vector<1x32xf32>
    %60 = math.rsqrt %59 : vector<1x32xf32>
    %61 = vector.broadcast %60 : vector<1x32xf32> to vector<8x32xf32>
    %62 = arith.mulf %57, %61 : vector<8x32xf32>
    %63 = vector.broadcast %43 : vector<1x32xf32> to vector<8x32xf32>
    %64 = arith.mulf %62, %63 : vector<8x32xf32>
    %65 = vector.broadcast %44 : vector<1x32xf32> to vector<8x32xf32>
    %66 = arith.addf %64, %65 : vector<8x32xf32>
    %cst_31 = arith.constant 5.000000e-01 : f32
    %67 = vector.broadcast %cst_31 : f32 to vector<8x32xf32>
    %68 = arith.mulf %67, %66 : vector<8x32xf32>
    %cst_32 = arith.constant 0.707106769 : f32
    %69 = vector.broadcast %cst_32 : f32 to vector<8x32xf32>
    %70 = arith.mulf %66, %69 : vector<8x32xf32>
    %71 = math.erf %70 : vector<8x32xf32>
    %cst_33 = arith.constant 1.000000e+00 : f32
    %72 = vector.broadcast %cst_33 : f32 to vector<8x32xf32>
    %73 = arith.addf %72, %71 : vector<8x32xf32>
    %74 = arith.mulf %68, %73 : vector<8x32xf32>
    %c0_34 = arith.constant 0 : index
    %c0_35 = arith.constant 0 : index
    %75 = vector.load %arg10[%c0_34, %c0_35] : memref<32x64xf32, #tpu.memory_space<vmem>>, vector<32x64xf32>
    %cst_36 = arith.constant dense<0.000000e+00> : vector<8x64xf32>
    %76 = tpu.matmul %74, %75, %cst_36 {dimension_numbers = #tpu.dot_dimension_numbers<[1], [0], [0], [1], [0, 0, 1, 1], [], []>} : vector<8x32xf32>, vector<32x64xf32>, vector<8x64xf32> -> vector<8x64xf32>
    %c0_37 = arith.constant 0 : index
    %c0_38 = arith.constant 0 : index
    %77 = vector.load %arg11[%c0_37, %c0_38] : memref<1x64xf32, #tpu.memory_space<vmem>>, vector<1x64xf32>
    %78 = vector.broadcast %77 : vector<1x64xf32> to vector<8x64xf32>
    %79 = arith.addf %76, %78 : vector<8x64xf32>
    %80 = tpu.iota {dimensions = array<i32: 1>} : vector<8x64xi32>
    %cst_39 = arith.constant 2.000000e+01 : f32
    %81 = vector.broadcast %cst_39 : f32 to vector<8x64xf32>
    %82 = arith.cmpf ogt, %79, %81 : vector<8x64xf32>
    %cst_40 = arith.constant 2.000000e+01 : f32
    %83 = vector.broadcast %cst_40 : f32 to vector<8x64xf32>
    %84 = arith.minimumf %79, %83 : vector<8x64xf32>
    %85 = math.exp %84 : vector<8x64xf32>
    %86 = math.log1p %85 : vector<8x64xf32>
    %87 = arith.select %82, %79, %86 : vector<8x64xi1>, vector<8x64xf32>
    %c32_i32 = arith.constant 32 : i32
    %88 = vector.broadcast %c32_i32 : i32 to vector<8x64xi32>
    %89 = arith.cmpi sge, %80, %88 : vector<8x64xi32>
    %90 = arith.select %89, %87, %79 : vector<8x64xi1>, vector<8x64xf32>
    %c0_41 = arith.constant 0 : index
    %c0_42 = arith.constant 0 : index
    %91 = vector.load %arg12[%c0_41, %c0_42] : memref<8x64xf32, #tpu.memory_space<vmem>>, vector<8x64xf32>
    tpu.vector_store %arg12[%c0_41, %c0_42], %90 {strides = array<i32>} : memref<8x64xf32, #tpu.memory_space<vmem>>, vector<8x64xf32>,
    return
  }
  func.func @transform_0(%arg0: i32) -> (i32, i32) {
    %c0_i32 = arith.constant 0 : i32
    %c0_i32_0 = arith.constant 0 : i32
    %c0_i32_1 = arith.constant 0 : i32
    return %c0_i32, %c0_i32_0 : i32, i32
  }
  func.func @transform_1(%arg0: i32) -> (i32, i32) {
    %c0_i32 = arith.constant 0 : i32
    %c0_i32_0 = arith.constant 0 : i32
    %c0_i32_1 = arith.constant 0 : i32
    return %c0_i32, %c0_i32_0 : i32, i32
  }
  func.func @transform_2(%arg0: i32) -> (i32, i32) {
    %c0_i32 = arith.constant 0 : i32
    %c0_i32_0 = arith.constant 0 : i32
    %c0_i32_1 = arith.constant 0 : i32
    return %c0_i32, %c0_i32_0 : i32, i32
  }
  func.func @transform_3(%arg0: i32) -> (i32, i32) {
    %c0_i32 = arith.constant 0 : i32
    %c0_i32_0 = arith.constant 0 : i32
    %c0_i32_1 = arith.constant 0 : i32
    return %c0_i32, %c0_i32_0 : i32, i32
  }
  func.func @transform_4(%arg0: i32) -> (i32, i32) {
    %c0_i32 = arith.constant 0 : i32
    %c0_i32_0 = arith.constant 0 : i32
    %c0_i32_1 = arith.constant 0 : i32
    return %c0_i32, %c0_i32_0 : i32, i32
  }
  func.func @transform_5(%arg0: i32) -> (i32, i32) {
    %c0_i32 = arith.constant 0 : i32
    %c0_i32_0 = arith.constant 0 : i32
    %c0_i32_1 = arith.constant 0 : i32
    return %c0_i32, %c0_i32_0 : i32, i32
  }
  func.func @transform_6(%arg0: i32) -> (i32, i32) {
    %c0_i32 = arith.constant 0 : i32
    %c0_i32_0 = arith.constant 0 : i32
    %c0_i32_1 = arith.constant 0 : i32
    return %c0_i32, %c0_i32_0 : i32, i32
  }
  func.func @transform_7(%arg0: i32) -> (i32, i32) {
    %c0_i32 = arith.constant 0 : i32
    %c0_i32_0 = arith.constant 0 : i32
    %c0_i32_1 = arith.constant 0 : i32
    return %c0_i32, %c0_i32_0 : i32, i32
  }
  func.func @transform_8(%arg0: i32) -> (i32, i32) {
    %c0_i32 = arith.constant 0 : i32
    %c0_i32_0 = arith.constant 0 : i32
    %c0_i32_1 = arith.constant 0 : i32
    return %c0_i32, %c0_i32_0 : i32, i32
  }
  func.func @transform_9(%arg0: i32) -> (i32, i32) {
    %c0_i32 = arith.constant 0 : i32
    %c0_i32_0 = arith.constant 0 : i32
    %c0_i32_1 = arith.constant 0 : i32
    return %c0_i32, %c0_i32_0 : i32, i32
  }
  func.func @transform_10(%arg0: i32) -> (i32, i32) {
    %c0_i32 = arith.constant 0 : i32
    %c0_i32_0 = arith.constant 0 : i32
    %c0_i32_1 = arith.constant 0 : i32
    return %c0_i32, %c0_i32_0 : i32, i32
  }
  func.func @transform_11(%arg0: i32) -> (i32, i32) {
    %c0_i32 = arith.constant 0 : i32
    %c0_i32_0 = arith.constant 0 : i32
    %c0_i32_1 = arith.constant 0 : i32
    return %c0_i32, %c0_i32_0 : i32, i32
  }
}

</mosaic_0001>

<bundles_post_ra>
// kernel: qc_inference_mlp_forward.1
= control target key start
LH: loop header
LB: loop body
LE: loop exit
PB: predicated region body
PF: predicated region fallthrough
CT: control target
= control target key end

     0   :  { %v1578_v3 = vmov 0.0   ;;  %vm89_vm0 = vcmask 64512   ;;  %vm1580_vm1 = vmmov 0   ;;  %vm1087_vm2 = vcmask 261120   ;;  %s2245_s1 = inlined_call_operand.vmem [shape: f32[8,1024], index: 1, kind: input, shape index: {}]   ;;  %s2246_s0 = inlined_call_operand.vmem [shape: f32[8,8], index: 0, kind: input, shape index: {}]   ;;  %s2247_s5 = inlined_call_operand.vmem [shape: f32[1024,32], index: 5, kind: input, shape index: {}]   ;;  %s2248_s2 = inlined_call_operand.vmem [shape: f32[1,1024], index: 2, kind: input, shape index: {}]   ;;  %s2249_s3 = inlined_call_operand.vmem [shape: f32[1,1024], index: 3, kind: input, shape index: {}]   ;;  %s2250_s4 = inlined_call_operand.vmem [shape: f32[1,1024], index: 4, kind: input, shape index: {}]   ;;  %s2251_s9 = inlined_call_operand.vmem [shape: f32[32,64], index: 9, kind: input, shape index: {}]   ;;  %s2252_s6 = inlined_call_operand.vmem [shape: f32[1,32], index: 6, kind: input, shape index: {}]   ;;  %s2253_s7 = inlined_call_operand.vmem [shape: f32[1,32], index: 7, kind: input, shape index: {}]   ;;  %s2254_s8 = inlined_call_operand.vmem [shape: f32[1,32], index: 8, kind: input, shape index: {}]   ;;  %s2255_s10 = inlined_call_operand.vmem [shape: f32[1,64], index: 10, kind: input, shape index: {}]   ;;  %s2256_s11 = inlined_call_operand.vmem [shape: f32[8,64], index: 11, kind: output, shape index: {}]  }
   0x1   :  { %v40_v0 = vld [vmem:[%s2245_s1 + $0x8] sm:$0xff]  ;;  %v39_v2 = vld [vmem:[%s2245_s1] sm:$0xff]  ;;  %157 = vmatprep.mubr.f32.mxu1 %v1578_v3  ;;  %299 = vmatprep.mubr.f32.mxu0 %v1578_v3  ;;  %v42_v6 = vld [vmem:[%s2245_s1 + $0x18] sm:$0xff]  ;;  %vm1230_vm6 = vcmask 523264  }
   0x2   :  { %v44_v1 = vld [vmem:[%s2245_s1 + $0x28] sm:$0xff]  ;;  %93 = vmatprep.subr.mxu1 %v40_v0  ;;  %v43_v4 = vld [vmem:[%s2245_s1 + $0x20] sm:$0xff]  ;;  %v41_v7 = vld [vmem:[%s2245_s1 + $0x10] sm:$0xff] }
   0x3   :  { %235 = vmatprep.subr.mxu0 %v44_v1  ;;  %v38_v5 = vld [vmem:[%s2246_s0] sm:$0xff]  ;;  %94 = vmatpush1.msra.mxu1 %v39_v2  ;;  %v46_v8 = vld [vmem:[%s2245_s1 + $0x38] sm:$0xff]  ;;  %v45_v9 = vld [vmem:[%s2245_s1 + $0x30] sm:$0xff] }
   0x4   :  { %236 = vmatpush1.msra.mxu0 %v43_v4  ;;  %1236 = vmatmul.mubr.msk.f32.vlgmr.msra.gmra.mrb[0].mxu1 %vm89_vm0, %v38_v5  ;;  %v686_v10 = vld [vmem:[%s2247_s5 + $0x80] sm:$0xff]  ;;  %v687_v11 = vld [vmem:[%s2247_s5 + $0x88] sm:$0xff]  ;;  %v688_v16 = vld [vmem:[%s2247_s5 + $0x90] sm:$0xff] }
   0x5   :  { %164 = vmatprep.subr.mxu1 %v42_v6  ;;  %1238 = vmatmul.mubr.msk.f32.vlgmr.msra.gmra.mrb[0].mxu0 %vm89_vm0, %v38_v5  ;;  %v1401_v12 = vpack.c.bf16 %v687_v11, %v686_v10  ;;  %v670_v13 = vld [vmem:[%s2247_s5] sm:$0xff]  ;;  %v671_v14 = vld [vmem:[%s2247_s5 + $0x8] sm:$0xff]  ;;  %v689_v17 = vld [vmem:[%s2247_s5 + $0x98] sm:$0xff] }
   0x6   :  { %165 = vmatpush1.msra.mxu1 %v41_v7  ;;  %228 = vmatprep.mubr.f32.mxu1 %v1578_v3  ;;  %v1403_v15 = vpack.c.bf16 %v671_v14, %v670_v13  ;;  %v718_v18 = vld [vmem:[%s2247_s5 + $0x180] sm:$0xff]  ;;  %v1405_v19 = vpack.c.bf16 %v689_v17, %v688_v16  ;;  %v719_v20 = vld [vmem:[%s2247_s5 + $0x188] sm:$0xff]  ;;  %v672_v21 = vld [vmem:[%s2247_s5 + $0x10] sm:$0xff] }
   0x7   :  { %306 = vmatprep.subr.mxu1 %v46_v8  ;;  %1402 = vmatprep.subr.bf16.mxu0 %v1401_v12  ;;  %v673_v22 = vld [vmem:[%s2247_s5 + $0x18] sm:$0xff]  ;;  %v1433_v23 = vpack.c.bf16 %v719_v20, %v718_v18  ;;  %v702_v25 = vld [vmem:[%s2247_s5 + $0x100] sm:$0xff]  ;;  %v703_v26 = vld [vmem:[%s2247_s5 + $0x108] sm:$0xff] }
   0x8   :  { %1237 = vmatmul.mubr.msk.f32.vlgmr.msra.gmra.mrb[2].mxu1 %vm89_vm0, %v38_v5  ;;  %1404 = vmatpush3.bf16.msra.mxu0 %v1403_v15  ;;  %v1407_v24 = vpack.c.bf16 %v673_v22, %v672_v21  ;;  %v1435_v27 = vpack.c.bf16 %v703_v26, %v702_v25  ;;  %v690_v28 = vld [vmem:[%s2247_s5 + $0xa0] sm:$0xff]  ;;  %v691_v29 = vld [vmem:[%s2247_s5 + $0xa8] sm:$0xff]  ;;  %v720_v30 = vld [vmem:[%s2247_s5 + $0x190] sm:$0xff] }
   0x9   :  { %307 = vmatpush1.msra.mxu1 %v45_v9  ;;  %370 = vmatprep.mubr.f32.mxu1 %v1578_v3  ;;  %v1409_v31 = vpack.c.bf16 %v691_v29, %v690_v28  ;;  %v721_v32 = vld [vmem:[%s2247_s5 + $0x198] sm:$0xff]  ;;  %v674_v33 = vld [vmem:[%s2247_s5 + $0x20] sm:$0xff]  ;;  %v675_v34 = vld [vmem:[%s2247_s5 + $0x28] sm:$0xff] }
   0xa   :  { %1406 = vmatprep.subr.bf16.mxu0 %v1405_v19  ;;  %1434 = vmatprep.subr.bf16.mxu1 %v1433_v23  ;;  %v1437_v35 = vpack.c.bf16 %v721_v32, %v720_v30  ;;  %v1411_v36 = vpack.c.bf16 %v675_v34, %v674_v33  ;;  %v704_v37 = vld [vmem:[%s2247_s5 + $0x110] sm:$0xff]  ;;  %v705_v38 = vld [vmem:[%s2247_s5 + $0x118] sm:$0xff]  ;;  %v722_v42 = vld [vmem:[%s2247_s5 + $0x1a0] sm:$0xff] }
   0xb   :  { %v1439_v39 = vpack.c.bf16 %v705_v38, %v704_v37  ;;  %v692_v40 = vld [vmem:[%s2247_s5 + $0xb0] sm:$0xff]  ;;  %v693_v41 = vld [vmem:[%s2247_s5 + $0xb8] sm:$0xff]  ;;  %v723_v44 = vld [vmem:[%s2247_s5 + $0x1a8] sm:$0xff] }
   0xc   :  { %1239 = vmatmul.mubr.msk.f32.vlgmr.msra.gmra.mrb[4].mxu1 %vm89_vm0, %v38_v5  ;;  %1408 = vmatpush3.bf16.msra.mxu0 %v1407_v24  ;;  %v1413_v43 = vpack.c.bf16 %v693_v41, %v692_v40  ;;  %v676_v45 = vld [vmem:[%s2247_s5 + $0x30] sm:$0xff]  ;;  %v677_v46 = vld [vmem:[%s2247_s5 + $0x38] sm:$0xff]  ;;  %v1441_v47 = vpack.c.bf16 %v723_v44, %v722_v42  ;;  %v706_v49 = vld [vmem:[%s2247_s5 + $0x120] sm:$0xff] }
   0xd   :  { %1436 = vmatpush3.bf16.msra.mxu1 %v1435_v27  ;;  %1410 = vmatprep.subr.bf16.mxu0 %v1409_v31  ;;  %v1415_v48 = vpack.c.bf16 %v677_v46, %v676_v45  ;;  %v707_v50 = vld [vmem:[%s2247_s5 + $0x128] sm:$0xff]  ;;  %v694_v52 = vld [vmem:[%s2247_s5 + $0xc0] sm:$0xff]  ;;  %v724_v54 = vld [vmem:[%s2247_s5 + $0x1b0] sm:$0xff] }
   0xe   :  { %1438 = vmatprep.subr.bf16.mxu1 %v1437_v35  ;;  %v1443_v51 = vpack.c.bf16 %v707_v50, %v706_v49  ;;  %v695_v53 = vld [vmem:[%s2247_s5 + $0xc8] sm:$0xff]  ;;  %v725_v56 = vld [vmem:[%s2247_s5 + $0x1b8] sm:$0xff]  ;;  %v678_v57 = vld [vmem:[%s2247_s5 + $0x40] sm:$0xff]  ;;  %v49_v49 = vlaneseq }
   0xf   :  { %v1417_v55 = vpack.c.bf16 %v695_v53, %v694_v52  ;;  %v679_v58 = vld [vmem:[%s2247_s5 + $0x48] sm:$0xff]  ;;  %v1445_v59 = vpack.c.bf16 %v725_v56, %v724_v54  ;;  %v708_v61 = vld [vmem:[%s2247_s5 + $0x130] sm:$0xff]  ;;  %v709_v62 = vld [vmem:[%s2247_s5 + $0x138] sm:$0xff] }
  0x10   :  { %1412 = vmatpush3.bf16.msra.mxu0 %v1411_v36  ;;  %v1419_v60 = vpack.c.bf16 %v679_v58, %v678_v57  ;;  %v1447_v63 = vpack.c.bf16 %v709_v62, %v708_v61  ;;  %v696_v0 = vld [vmem:[%s2247_s5 + $0xd0] sm:$0xff]  ;;  %v697_v1 = vld [vmem:[%s2247_s5 + $0xd8] sm:$0xff]  ;;  %v726_v2 = vld [vmem:[%s2247_s5 + $0x1c0] sm:$0xff]  ;;  %v50_v50 = vshrl.u32 %v49_v49, 7 }
  0x11   :  { %1440 = vmatpush3.bf16.msra.mxu1 %v1439_v39  ;;  %1414 = vmatprep.subr.bf16.mxu0 %v1413_v43  ;;  %v1421_v4 = vpack.c.bf16 %v697_v1, %v696_v0  ;;  %v727_v5 = vld [vmem:[%s2247_s5 + $0x1c8] sm:$0xff]  ;;  %v680_v6 = vld [vmem:[%s2247_s5 + $0x50] sm:$0xff]  ;;  %v681_v7 = vld [vmem:[%s2247_s5 + $0x58] sm:$0xff] }
  0x12   :  { %1442 = vmatprep.subr.bf16.mxu1 %v1441_v47  ;;  %v1449_v8 = vpack.c.bf16 %v727_v5, %v726_v2  ;;  %v1423_v9 = vpack.c.bf16 %v681_v7, %v680_v6  ;;  %v710_v10 = vld [vmem:[%s2247_s5 + $0x140] sm:$0xff]  ;;  %v711_v11 = vld [vmem:[%s2247_s5 + $0x148] sm:$0xff]  ;;  %v728_v15 = vld [vmem:[%s2247_s5 + $0x1d0] sm:$0xff]  ;;  %v1886_v53 = vsub.s32 4, %v50_v50  ;;  %v1888_v54 = vsub.s32 1, %v50_v50 }
  0x13   :  { %v698_v12 = vld [vmem:[%s2247_s5 + $0xe0] sm:$0xff]  ;;  %v1451_v13 = vpack.c.bf16 %v711_v11, %v710_v10  ;;  %v699_v14 = vld [vmem:[%s2247_s5 + $0xe8] sm:$0xff]  ;;  %v729_v16 = vld [vmem:[%s2247_s5 + $0x1d8] sm:$0xff]  ;;  %v1893_v57 = vsub.s32 2, %v50_v50 }
  0x14   :  { %1416 = vmatpush3.bf16.msra.mxu0 %v1415_v48  ;;  %v1425_v17 = vpack.c.bf16 %v699_v14, %v698_v12  ;;  %v1453_v18 = vpack.c.bf16 %v729_v16, %v728_v15  ;;  %v682_v19 = vld [vmem:[%s2247_s5 + $0x60] sm:$0xff]  ;;  %v683_v20 = vld [vmem:[%s2247_s5 + $0x68] sm:$0xff]  ;;  %v712_v21 = vld [vmem:[%s2247_s5 + $0x150] sm:$0xff] }
  0x15   :  { %1444 = vmatpush3.bf16.msra.mxu1 %v1443_v51  ;;  %1418 = vmatprep.subr.bf16.mxu0 %v1417_v55  ;;  %v1427_v22 = vpack.c.bf16 %v683_v20, %v682_v19  ;;  %v713_v23 = vld [vmem:[%s2247_s5 + $0x158] sm:$0xff]  ;;  %v700_v24 = vld [vmem:[%s2247_s5 + $0xf0] sm:$0xff]  ;;  %v730_v28 = vld [vmem:[%s2247_s5 + $0x1e0] sm:$0xff]  ;;  %v1881_v51 = vsub.s32 0, %v50_v50  ;;  %v1890_v55 = vsub.s32 5, %v50_v50 }
  0x16   :  { %1446 = vmatprep.subr.bf16.mxu1 %v1445_v59  ;;  %v701_v25 = vld [vmem:[%s2247_s5 + $0xf8] sm:$0xff]  ;;  %v1455_v26 = vpack.c.bf16 %v713_v23, %v712_v21  ;;  %v731_v29 = vld [vmem:[%s2247_s5 + $0x1e8] sm:$0xff]  ;;  %v684_v30 = vld [vmem:[%s2247_s5 + $0x70] sm:$0xff] }
  0x17   :  { %v1429_v27 = vpack.c.bf16 %v701_v25, %v700_v24  ;;  %v1457_v31 = vpack.c.bf16 %v731_v29, %v730_v28  ;;  %v685_v32 = vld [vmem:[%s2247_s5 + $0x78] sm:$0xff]  ;;  %v714_v33 = vld [vmem:[%s2247_s5 + $0x160] sm:$0xff]  ;;  %v715_v34 = vld [vmem:[%s2247_s5 + $0x168] sm:$0xff] }
  0x18   :  { %1420 = vmatpush3.bf16.msra.mxu0 %v1419_v60  ;;  %v1431_v35 = vpack.c.bf16 %v685_v32, %v684_v30  ;;  %v1459_v36 = vpack.c.bf16 %v715_v34, %v714_v33  ;;  %v732_v37 = vld [vmem:[%s2247_s5 + $0x1f0] sm:$0xff]  ;;  %v733_v38 = vld [vmem:[%s2247_s5 + $0x1f8] sm:$0xff]  ;;  %v750_v39 = vld [vmem:[%s2247_s5 + $0x280] sm:$0xff]  ;;  %v1897_v60 = vsub.s32 3, %v50_v50 }
  0x19   :  { %1448 = vmatpush3.bf16.msra.mxu1 %v1447_v63  ;;  %1422 = vmatprep.subr.bf16.mxu0 %v1421_v4  ;;  %v1461_v40 = vpack.c.bf16 %v733_v38, %v732_v37  ;;  %v751_v41 = vld [vmem:[%s2247_s5 + $0x288] sm:$0xff]  ;;  %v716_v42 = vld [vmem:[%s2247_s5 + $0x170] sm:$0xff]  ;;  %v717_v43 = vld [vmem:[%s2247_s5 + $0x178] sm:$0xff]  ;;  %v1903_v4 = vsub.s32 6, %v50_v50 }
  0x1a   :  { %1450 = vmatprep.subr.bf16.mxu1 %v1449_v8  ;;  %v1465_v44 = vpack.c.bf16 %v751_v41, %v750_v39  ;;  %v1463_v45 = vpack.c.bf16 %v717_v43, %v716_v42  ;;  %v782_v46 = vld [vmem:[%s2247_s5 + $0x380] sm:$0xff]  ;;  %v783_v47 = vld [vmem:[%s2247_s5 + $0x388] sm:$0xff] }
  0x1b   :  { %v1497_v48 = vpack.c.bf16 %v783_v47, %v782_v46  ;;  %v47_v52 = vld [vmem:[%s2248_s2] sm:$0xff] }
  0x1c   :  { %1424 = vmatpush3.bf16.msra.mxu0 %v1423_v9  ;;  %v52_v56 = vrot.slane %v47_v52, %v1881_v51  ;;  %v68_v58 = vrot.slane %v47_v52, %v1886_v53  ;;  %v56_v59 = vrot.slane %v47_v52, %v1888_v54  ;;  %v72_v61 = vrot.slane %v47_v52, %v1890_v55 }
  0x1d   :  { %1452 = vmatpush3.bf16.msra.mxu1 %v1451_v13  ;;  %1426 = vmatprep.subr.bf16.mxu0 %v1425_v17  ;;  %v60_v2 = vrot.slane %v47_v52, %v1893_v57  ;;  %v64_v8 = vrot.slane %v47_v52, %v1897_v60  ;;  %v1910_v9 = vsub.s32 7, %v50_v50  ;;  %v76_v19 = vrot.slane %v47_v52, %v1903_v4 }
  0x1e   :  { %1454 = vmatprep.subr.bf16.mxu1 %v1453_v18 }
  0x1f   :  { %v80_v23 = vrot.slane %v47_v52, %v1910_v9 }
  0x20   :  { %1428 = vmatpush3.bf16.msra.mxu0 %v1427_v22 }
  0x21   :  { %1456 = vmatpush3.bf16.msra.mxu1 %v1455_v26  ;;  %1430 = vmatprep.subr.bf16.mxu0 %v1429_v27 }
  0x22   :  { %1458 = vmatprep.subr.bf16.mxu1 %v1457_v31 }
  0x24   :  { %1432 = vmatpush3.bf16.msra.mxu0 %v1431_v35 }
  0x25   :  { %1460 = vmatpush3.bf16.msra.mxu1 %v1459_v36  ;;  %1466 = vmatprep.subr.bf16.mxu0 %v1465_v44 }
  0x26   :  { %1462 = vmatprep.subr.bf16.mxu1 %v1461_v40 }
  0x29   :  { %1464 = vmatpush3.bf16.msra.mxu1 %v1463_v45 }
  0x2a   :  { %1498 = vmatprep.subr.bf16.mxu1 %v1497_v48 }
  0xd7   :  { %v159_v62 = vpop.f32.mrb[0].mxu1 }
  0xd8   :  { %v1900_v63 = vadd.f32 %v159_v62, %v52_v56  ;;  %v301_v0 = vpop.f32.mrb[0].mxu0  ;;  %v161_v1 = vpop.f32.mrb[1].mxu1 }
  0xd9   :  { %v1905_v5 = vadd.f32 %v301_v0, %v68_v58  ;;  %v1907_v6 = vadd.f32 %v161_v1, %v56_v59  ;;  %v303_v7 = vpop.f32.mrb[1].mxu0 }
  0xda   :  { %v379_v10 = vrot.slane %v1900_v63, 4  ;;  %v304_v11 = vadd.f32 %v303_v7, %v72_v61 }
  0xdb   :  { %v403_v12 = vrot.slane %v1905_v5, 4  ;;  %v385_v13 = vrot.slane %v1907_v6, 4  ;;  %v230_v14 = vpop.f32.mrb[2].mxu1 }
  0xdc   :  { %v380_v15 = vadd.f32 %v379_v10, %v1900_v63  ;;  %v409_v16 = vrot.slane %v304_v11, 4  ;;  %v1916_v17 = vadd.f32 %v230_v14, %v60_v2  ;;  %v232_v18 = vpop.f32.mrb[3].mxu1 }
  0xdd   :  { %v404_v20 = vadd.f32 %v403_v12, %v1905_v5  ;;  %v386_v21 = vadd.f32 %v385_v13, %v1907_v6  ;;  %v1921_v22 = vadd.f32 %v232_v18, %v64_v8 }
  0xde   :  { %v381_v24 = vrot.slane %v380_v15, 2  ;;  %v410_v25 = vadd.f32 %v409_v16, %v304_v11  ;;  %v391_v26 = vrot.slane %v1916_v17, 4 }
  0xdf   :  { %v405_v27 = vrot.slane %v404_v20, 2  ;;  %v387_v28 = vrot.slane %v386_v21, 2  ;;  %v397_v29 = vrot.slane %v1921_v22, 4  ;;  %v372_v30 = vpop.f32.mrb[4].mxu1 }
  0xe0   :  { %v382_v31 = vadd.f32 %v381_v24, %v380_v15  ;;  %v411_v32 = vrot.slane %v410_v25, 2  ;;  %v392_v33 = vadd.f32 %v391_v26, %v1916_v17  ;;  %v1927_v34 = vadd.f32 %v372_v30, %v76_v19  ;;  %v374_v35 = vpop.f32.mrb[5].mxu1 }
  0xe1   :  { %v406_v36 = vadd.f32 %v405_v27, %v404_v20  ;;  %v388_v37 = vadd.f32 %v387_v28, %v386_v21  ;;  %v398_v38 = vadd.f32 %v397_v29, %v1921_v22  ;;  %v1930_v39 = vadd.f32 %v374_v35, %v80_v23 }
  0xe2   :  { %v383_v40 = vrot.slane %v382_v31, 1  ;;  %v412_v41 = vadd.f32 %v411_v32, %v410_v25  ;;  %v393_v42 = vrot.slane %v392_v33, 2  ;;  %v415_v43 = vrot.slane %v1927_v34, 4 }
  0xe3   :  { %v407_v44 = vrot.slane %v406_v36, 1  ;;  %v389_v45 = vrot.slane %v388_v37, 1  ;;  %v399_v46 = vrot.slane %v398_v38, 2  ;;  %v421_v47 = vrot.slane %v1930_v39, 4 }
  0xe4   :  { %v384_v48 = vadd.f32 %v383_v40, %v382_v31  ;;  %v413_v50 = vrot.slane %v412_v41, 1  ;;  %v394_v52 = vadd.f32 %v393_v42, %v392_v33  ;;  %v416_v56 = vadd.f32 %v415_v43, %v1927_v34 }
  0xe5   :  { %v408_v58 = vadd.f32 %v407_v44, %v406_v36  ;;  %v390_v59 = vadd.f32 %v389_v45, %v388_v37  ;;  %v400_v61 = vadd.f32 %v399_v46, %v398_v38  ;;  %v422_v62 = vadd.f32 %v421_v47, %v1930_v39 }
  0xe6   :  { %v428_v0 = vmul.f32 0.125, %v384_v48  ;;  %v414_v1 = vadd.f32 %v413_v50, %v412_v41  ;;  %v395_v2 = vrot.slane %v394_v52, 1  ;;  %v417_v7 = vrot.slane %v416_v56, 2 }
  0xe7   :  { %v432_v8 = vmul.f32 0.125, %v408_v58  ;;  %v429_v10 = vmul.f32 0.125, %v390_v59  ;;  %v401_v12 = vrot.slane %v400_v61, 1  ;;  %v423_v13 = vrot.slane %v422_v62, 2 }
  0xe8   :  { %v1937_v14 = vsub.f32 %v1900_v63, %v428_v0  ;;  %v433_v15 = vmul.f32 0.125, %v414_v1  ;;  %v396_v16 = vadd.f32 %v395_v2, %v394_v52  ;;  %v418_v18 = vadd.f32 %v417_v7, %v416_v56 }
  0xe9   :  { %v1940_v19 = vsub.f32 %v1905_v5, %v432_v8  ;;  %v1943_v20 = vsub.f32 %v1907_v6, %v429_v10  ;;  %v402_v21 = vadd.f32 %v401_v12, %v400_v61  ;;  %v424_v23 = vadd.f32 %v423_v13, %v422_v62 }
  0xea   :  { %v444_v24 = vmul.f32 %v1937_v14, %v1937_v14  ;;  %v1947_v25 = vsub.f32 %v304_v11, %v433_v15  ;;  %v430_v26 = vmul.f32 0.125, %v396_v16  ;;  %v419_v27 = vrot.slane %v418_v18, 1 }
  0xeb   :  { %v448_v63 = vmul.f32 %v1940_v19, %v1940_v19  ;;  %v445_v28 = vmul.f32 %v1943_v20, %v1943_v20  ;;  %v431_v5 = vmul.f32 0.125, %v402_v21  ;;  %v425_v29 = vrot.slane %v424_v23, 1 }
  0xec   :  { %v452_v30 = vrot.slane %v444_v24, 4  ;;  %v449_v6 = vmul.f32 %v1947_v25, %v1947_v25  ;;  %v1956_v31 = vsub.f32 %v1916_v17, %v430_v26  ;;  %v420_v32 = vadd.f32 %v419_v27, %v418_v18 }
  0xed   :  { %v476_v11 = vrot.slane %v448_v63, 4  ;;  %v458_v33 = vrot.slane %v445_v28, 4  ;;  %v1959_v35 = vsub.f32 %v1921_v22, %v431_v5  ;;  %v426_v36 = vadd.f32 %v425_v29, %v424_v23 }
  0xee   :  { %v453_v37 = vadd.f32 %v452_v30, %v444_v24  ;;  %v482_v38 = vrot.slane %v449_v6, 4  ;;  %v446_v40 = vmul.f32 %v1956_v31, %v1956_v31  ;;  %v434_v41 = vmul.f32 0.125, %v420_v32 }
  0xef   :  { %v459_v42 = vadd.f32 %v458_v33, %v445_v28  ;;  %v447_v43 = vmul.f32 %v1959_v35, %v1959_v35  ;;  %v435_v44 = vmul.f32 0.125, %v426_v36  ;;  %v477_v22 = vadd.f32 %v476_v11, %v448_v63 }
  0xf0   :  { %v454_v17 = vrot.slane %v453_v37, 2  ;;  %v483_v45 = vadd.f32 %v482_v38, %v449_v6  ;;  %v464_v46 = vrot.slane %v446_v40, 4  ;;  %v1966_v47 = vsub.f32 %v1927_v34, %v434_v41 }
  0xf1   :  { %v460_v48 = vrot.slane %v459_v42, 2  ;;  %v470_v50 = vrot.slane %v447_v43, 4  ;;  %v1969_v52 = vsub.f32 %v1930_v39, %v435_v44  ;;  %v478_v15 = vrot.slane %v477_v22, 2 }
  0xf2   :  { %v455_v56 = vadd.f32 %v454_v17, %v453_v37  ;;  %v484_v58 = vrot.slane %v483_v45, 2  ;;  %v465_v59 = vadd.f32 %v464_v46, %v446_v40  ;;  %v450_v61 = vmul.f32 %v1966_v47, %v1966_v47 }
  0xf3   :  { %v461_v62 = vadd.f32 %v460_v48, %v459_v42  ;;  %v471_v0 = vadd.f32 %v470_v50, %v447_v43  ;;  %v451_v1 = vmul.f32 %v1969_v52, %v1969_v52  ;;  %v479_v32 = vadd.f32 %v478_v15, %v477_v22 }
  0xf4   :  { %v456_v2 = vrot.slane %v455_v56, 1  ;;  %v485_v34 = vadd.f32 %v484_v58, %v483_v45  ;;  %v466_v7 = vrot.slane %v465_v59, 2  ;;  %v488_v8 = vrot.slane %v450_v61, 4 }
  0xf5   :  { %v462_v10 = vrot.slane %v461_v62, 1  ;;  %v472_v12 = vrot.slane %v471_v0, 2  ;;  %v494_v13 = vrot.slane %v451_v1, 4  ;;  %v480_v17 = vrot.slane %v479_v32, 1 }
  0xf6   :  { %v457_v39 = vadd.f32 %v456_v2, %v455_v56  ;;  %v486_v16 = vrot.slane %v485_v34, 1  ;;  %v467_v18 = vadd.f32 %v466_v7, %v465_v59  ;;  %v489_v24 = vadd.f32 %v488_v8, %v450_v61  ;;  %v1978_v56 = vld [vmem:[%s2249_s3] sm:$0xff] }
  0xf7   :  { %v463_v21 = vadd.f32 %v462_v10, %v461_v62  ;;  %v473_v23 = vadd.f32 %v472_v12, %v471_v0  ;;  %v495_v26 = vadd.f32 %v494_v13, %v451_v1  ;;  %v481_v58 = vadd.f32 %v480_v17, %v479_v32  ;;  %v1983_v62 = vld [vmem:[%s2250_s4] sm:$0xff] }
  0xf8   :  { %v500_v27 = vmul.f32 0.125, %v457_v39  ;;  %v487_v63 = vadd.f32 %v486_v16, %v485_v34  ;;  %v468_v28 = vrot.slane %v467_v18, 1  ;;  %v490_v38 = vrot.slane %v489_v24, 2 }
  0xf9   :  { %v501_v5 = vmul.f32 0.125, %v463_v21  ;;  %v474_v29 = vrot.slane %v473_v23, 1  ;;  %v496_v30 = vrot.slane %v495_v26, 2  ;;  %v536_v0 = vrot.slane %v1978_v56, %v1881_v51 }
  0xfa   :  { %v508_v6 = vadd.f32 1e-05, %v500_v27  ;;  %v505_v11 = vmul.f32 0.125, %v487_v63  ;;  %v469_v33 = vadd.f32 %v468_v28, %v467_v18  ;;  %v491_v48 = vadd.f32 %v490_v38, %v489_v24 }
  0xfb   :  { %v509_v36 = vadd.f32 1e-05, %v501_v5  ;;  %v475_v37 = vadd.f32 %v474_v29, %v473_v23  ;;  %v497_v40 = vadd.f32 %v496_v30, %v495_v26  ;;  %v504_v2 = vmul.f32 0.125, %v481_v58 }
  0xfc   :  { %1538 = vrsqrt.f32 %v508_v6  ;;  %v513_v41 = vadd.f32 1e-05, %v505_v11  ;;  %v502_v42 = vmul.f32 0.125, %v469_v33  ;;  %v492_v59 = vrot.slane %v491_v48, 1 }
  0xfd   :  { %v503_v43 = vmul.f32 0.125, %v475_v37  ;;  %v498_v44 = vrot.slane %v497_v40, 1  ;;  %1540 = vrsqrt.f32 %v509_v36  ;;  %v585_v7 = vrot.slane %v1983_v62, %v1881_v51 }
  0xfe   :  { %v510_v45 = vadd.f32 1e-05, %v502_v42  ;;  %1542 = vrsqrt.f32 %v513_v41  ;;  %v540_v8 = vrot.slane %v1978_v56, %v1888_v54  ;;  %v493_v10 = vadd.f32 %v492_v59, %v491_v48 }
  0xff   :  { %v511_v46 = vadd.f32 1e-05, %v503_v43  ;;  %v499_v50 = vadd.f32 %v498_v44, %v497_v40  ;;  %v556_v13 = vrot.slane %v1978_v56, %v1890_v55  ;;  %v544_v39 = vrot.slane %v1978_v56, %v1893_v57 }
 0x100   :  { %1544 = vrsqrt.f32 %v510_v45  ;;  %v589_v51 = vrot.slane %v1983_v62, %v1888_v54  ;;  %v512_v23 = vadd.f32 1e-05, %v504_v2  ;;  %v548_v26 = vrot.slane %v1978_v56, %v1897_v60 }
 0x101   :  { %1546 = vrsqrt.f32 %v511_v46  ;;  %v507_v22 = vmul.f32 0.125, %v499_v50  ;;  %v605_v27 = vrot.slane %v1983_v62, %v1890_v55  ;;  %v506_v29 = vmul.f32 0.125, %v493_v10  ;;  %v736_v10 = vld [vmem:[%s2247_s5 + $0x210] sm:$0xff] }
 0x102   :  { %v564_v33 = vrot.slane %v1978_v56, %v1910_v9  ;;  %v613_v41 = vrot.slane %v1983_v62, %v1910_v9  ;;  %v734_v9 = vld [vmem:[%s2247_s5 + $0x200] sm:$0xff] }
 0x103   :  { %v515_v61 = vadd.f32 1e-05, %v507_v22  ;;  %v514_v38 = vadd.f32 1e-05, %v506_v29  ;;  %v735_v22 = vld [vmem:[%s2247_s5 + $0x208] sm:$0xff] }
 0x105   :  { %1548 = vrsqrt.f32 %v515_v61 }
 0x106   :  { %v1539_v1 = vpop.eup %1538  ;;  %1550 = vrsqrt.f32 %v512_v23  ;;  %v755_v23 = vld [vmem:[%s2247_s5 + $0x2a8] sm:$0xff] }
 0x107   :  { %v524_v34 = vmul.f32 %v1539_v1, %v1937_v14  ;;  %v1541_v12 = vpop.eup %1540  ;;  %v593_v14 = vrot.slane %v1983_v62, %v1893_v57  ;;  %v753_v1 = vld [vmem:[%s2247_s5 + $0x298] sm:$0xff] }
 0x108   :  { %v1543_v15 = vpop.eup %1542  ;;  %v525_v18 = vmul.f32 %v1541_v12, %v1943_v20  ;;  %v737_v12 = vld [vmem:[%s2247_s5 + $0x218] sm:$0xff] }
 0x109   :  { %v573_v16 = vmul.f32 %v536_v0, %v524_v34  ;;  %v529_v24 = vmul.f32 %v1543_v15, %v1947_v25  ;;  %v597_v25 = vrot.slane %v1983_v62, %v1897_v60  ;;  %v752_v0 = vld [vmem:[%s2247_s5 + $0x290] sm:$0xff]  ;;  %v552_v34 = vrot.slane %v1978_v56, %v1886_v53 }
 0x10a   :  { %v1545_v21 = vpop.eup %1544  ;;  %v574_v5 = vmul.f32 %v540_v8, %v525_v18  ;;  %v1467_v18 = vpack.c.bf16 %v735_v22, %v734_v9  ;;  %v741_v9 = vld [vmem:[%s2247_s5 + $0x238] sm:$0xff]  ;;  %v770_v22 = vld [vmem:[%s2247_s5 + $0x320] sm:$0xff] }
 0x10b   :  { %v1547_v63 = vpop.eup %1546  ;;  %v622_v28 = vadd.f32 %v585_v7, %v573_v16  ;;  %v526_v20 = vmul.f32 %v1545_v21, %v1956_v31  ;;  %v578_v57 = vmul.f32 %v556_v13, %v529_v24  ;;  %v766_v13 = vld [vmem:[%s2247_s5 + $0x300] sm:$0xff] }
 0x10c   :  { %v527_v30 = vmul.f32 %v1547_v63, %v1959_v35  ;;  %v623_v6 = vadd.f32 %v589_v51, %v574_v5  ;;  %v767_v51 = vld [vmem:[%s2247_s5 + $0x308] sm:$0xff]  ;;  %v754_v21 = vld [vmem:[%s2247_s5 + $0x2a0] sm:$0xff] }
 0x10d   :  { %v575_v54 = vmul.f32 %v544_v39, %v526_v20  ;;  %v638_v32 = vmul.f32 0.70710677, %v622_v28  ;;  %v627_v55 = vadd.f32 %v605_v27, %v578_v57  ;;  %v630_v7 = vmul.f32 0.5, %v622_v28  ;;  %v784_v57 = vld [vmem:[%s2247_s5 + $0x390] sm:$0xff] }
 0x10e   :  { %v576_v11 = vmul.f32 %v548_v26, %v527_v30  ;;  %v639_v31 = vmul.f32 0.70710677, %v623_v6  ;;  %v631_v59 = vmul.f32 0.5, %v623_v6  ;;  %v601_v26 = vrot.slane %v1983_v62, %v1886_v53  ;;  %v785_v30 = vld [vmem:[%s2247_s5 + $0x398] sm:$0xff] }
 0x10f   :  { %v1549_v36 = vpop.eup %1548  ;;  %v624_v37 = vadd.f32 %v593_v14, %v575_v54  ;;  %1552 = verf.f32 %v638_v32  ;;  %v643_v35 = vmul.f32 0.70710677, %v627_v55  ;;  %v635_v14 = vmul.f32 0.5, %v627_v55  ;;  %v738_v55 = vld [vmem:[%s2247_s5 + $0x220] sm:$0xff] }
 0x110   :  { %v531_v40 = vmul.f32 %v1549_v36, %v1969_v52  ;;  %1554 = verf.f32 %v639_v31  ;;  %v625_v42 = vadd.f32 %v597_v25, %v576_v11  ;;  %v1551_v46 = vpop.eup %1550  ;;  %v1469_v27 = vpack.c.bf16 %v753_v1, %v752_v0  ;;  %v739_v36 = vld [vmem:[%s2247_s5 + $0x228] sm:$0xff]  ;;  %v788_v0 = vld [vmem:[%s2247_s5 + $0x3b0] sm:$0xff]  ;;  %v789_v1 = vld [vmem:[%s2247_s5 + $0x3b8] sm:$0xff] }
 0x111   :  { %1556 = verf.f32 %v643_v35  ;;  %v640_v43 = vmul.f32 0.70710677, %v624_v37  ;;  %v528_v15 = vmul.f32 %v1551_v46, %v1940_v19  ;;  %v560_v28 = vrot.slane %v1978_v56, %v1903_v4  ;;  %v769_v35 = vld [vmem:[%s2247_s5 + $0x318] sm:$0xff] }
 0x112   :  { %v580_v60 = vmul.f32 %v564_v33, %v531_v40  ;;  %1558 = vrsqrt.f32 %v514_v38  ;;  %v641_v44 = vmul.f32 0.70710677, %v625_v42  ;;  %v633_v20 = vmul.f32 0.5, %v625_v42  ;;  %v757_v42 = vld [vmem:[%s2247_s5 + $0x2b8] sm:$0xff] }
 0x113   :  { %1560 = verf.f32 %v640_v43  ;;  %v632_v53 = vmul.f32 0.5, %v624_v37  ;;  %v1471_v54 = vpack.c.bf16 %v737_v12, %v736_v10  ;;  %v1499_v6 = vpack.c.bf16 %v767_v51, %v766_v13  ;;  %v787_v43 = vld [vmem:[%s2247_s5 + $0x3a8] sm:$0xff]  ;;  %v790_v51 = vld [vmem:[%s2247_s5 + $0x3c0] sm:$0xff] }
 0x114   :  { %v629_v17 = vadd.f32 %v613_v41, %v580_v60  ;;  %1562 = verf.f32 %v641_v44  ;;  %v1473_v32 = vpack.c.bf16 %v755_v23, %v754_v21  ;;  %v577_v11 = vmul.f32 %v552_v34, %v528_v15  ;;  %v756_v41 = vld [vmem:[%s2247_s5 + $0x2b0] sm:$0xff]  ;;  %v786_v60 = vld [vmem:[%s2247_s5 + $0x3a0] sm:$0xff]  ;;  %v743_v10 = vld [vmem:[%s2247_s5 + $0x248] sm:$0xff] }
 0x115   :  { %v1501_v38 = vpack.c.bf16 %v785_v30, %v784_v57  ;;  %v609_v44 = vrot.slane %v1983_v62, %v1903_v4  ;;  %v1477_v4 = vpack.c.bf16 %v757_v42, %v756_v41  ;;  %v1505_v62 = vpack.c.bf16 %v787_v43, %v786_v60  ;;  %v772_v15 = vld [vmem:[%s2247_s5 + $0x330] sm:$0xff]  ;;  %v791_v21 = vld [vmem:[%s2247_s5 + $0x3c8] sm:$0xff]  ;;  %v749_v60 = vld [vmem:[%s2247_s5 + $0x278] sm:$0xff] }
 0x116   :  { %v645_v45 = vmul.f32 0.70710677, %v629_v17  ;;  %v637_v31 = vmul.f32 0.5, %v629_v17  ;;  %v2085_v46 = vadd.f32 %v601_v26, %v577_v11  ;;  %v744_v26 = vld [vmem:[%s2247_s5 + $0x250] sm:$0xff]  ;;  %v763_v57 = vld [vmem:[%s2247_s5 + $0x2e8] sm:$0xff]  ;;  %v778_v43 = vld [vmem:[%s2247_s5 + $0x360] sm:$0xff] }
 0x117   :  { %v792_v30 = vld [vmem:[%s2247_s5 + $0x3d0] sm:$0xff] }
 0x118   :  { %1564 = verf.f32 %v645_v45  ;;  %v1475_v45 = vpack.c.bf16 %v739_v36, %v738_v55  ;;  %v642_v12 = vmul.f32 0.70710677, %v2085_v46  ;;  %v777_v55 = vld [vmem:[%s2247_s5 + $0x358] sm:$0xff]  ;;  %v764_v36 = vld [vmem:[%s2247_s5 + $0x2f0] sm:$0xff] }
 0x119   :  { %v1553_v48 = vpop.eup %1552 }
 0x11a   :  { %v1555_v52 = vpop.eup %1554  ;;  %v654_v50 = vadd.f32 1.0, %v1553_v48  ;;  %1566 = verf.f32 %v642_v12  ;;  %v1130_v12 = vld [vmem:[%s2251_s9 + $0x10] sm:$0xff] }
 0x11b   :  { %v1557_v58 = vpop.eup %1556  ;;  %v655_v61 = vadd.f32 1.0, %v1555_v52 }
 0x11c   :  { %v1559_v2 = vpop.eup %1558  ;;  %v659_v8 = vadd.f32 1.0, %v1557_v58  ;;  %v662_v19 = vmul.f32 %v654_v50, %v630_v7  ;;  %v740_v50 = vld [vmem:[%s2247_s5 + $0x230] sm:$0xff]  ;;  %v771_v58 = vld [vmem:[%s2247_s5 + $0x328] sm:$0xff] }
 0x11d   :  { %v1561_v39 = vpop.eup %1560  ;;  %v663_v16 = vmul.f32 %v655_v61, %v631_v59  ;;  %v530_v56 = vmul.f32 %v1559_v2, %v1966_v47  ;;  %v768_v47 = vld [vmem:[%s2247_s5 + $0x310] sm:$0xff]  ;;  %v758_v59 = vld [vmem:[%s2247_s5 + $0x2c0] sm:$0xff]  ;;  %v759_v61 = vld [vmem:[%s2247_s5 + $0x2c8] sm:$0xff]  ;;  %v1479_v34 = vpack.c.bf16 %v741_v9, %v740_v50  ;;  %v1507_v7 = vpack.c.bf16 %v771_v58, %v770_v22 }
 0x11e   :  { %v1563_v24 = vpop.eup %1562  ;;  %v656_v63 = vadd.f32 1.0, %v1561_v39  ;;  %v667_v5 = vmul.f32 %v659_v8, %v635_v14  ;;  %v1503_v52 = vpack.c.bf16 %v769_v35, %v768_v47  ;;  %v742_v8 = vld [vmem:[%s2247_s5 + $0x240] sm:$0xff]  ;;  %v1481_v13 = vpack.c.bf16 %v759_v61, %v758_v59  ;;  %v761_v14 = vld [vmem:[%s2247_s5 + $0x2d8] sm:$0xff]  ;;  %v748_v35 = vld [vmem:[%s2247_s5 + $0x270] sm:$0xff] }
 0x11f   :  { %869 = vmatprep.mubr.f32.mxu0 %v663_v16  ;;  %v657_v29 = vadd.f32 1.0, %v1563_v24  ;;  %v579_v48 = vmul.f32 %v560_v28, %v530_v56  ;;  %v1509_v39 = vpack.c.bf16 %v789_v1, %v788_v0  ;;  %v773_v16 = vld [vmem:[%s2247_s5 + $0x338] sm:$0xff]  ;;  %v1483_v23 = vpack.c.bf16 %v743_v10, %v742_v8  ;;  %v1128_v10 = vld [vmem:[%s2251_s9] sm:$0xff] }
 0x120   :  { %870 = vmatmul.mubr.f32.vlgmr.msra.gmra.mrb[2].mxu0 %v662_v19  ;;  %v664_v37 = vmul.f32 %v656_v63, %v632_v53  ;;  %v1511_v24 = vpack.c.bf16 %v773_v16, %v772_v15  ;;  %v745_v19 = vld [vmem:[%s2247_s5 + $0x258] sm:$0xff]  ;;  %v1513_v28 = vpack.c.bf16 %v791_v21, %v790_v51  ;;  %v634_v59 = vmul.f32 0.5, %v2085_v46  ;;  %v1129_v46 = vld [vmem:[%s2251_s9 + $0x8] sm:$0xff] }
 0x121   :  { %1468 = vmatpush3.bf16.msra.mxu0 %v1467_v18  ;;  %1009 = vmatprep.mubr.f32.mxu0 %v667_v5  ;;  %v665_v33 = vmul.f32 %v657_v29, %v633_v20  ;;  %v2111_v2 = vadd.f32 %v609_v44, %v579_v48  ;;  %v760_v18 = vld [vmem:[%s2247_s5 + $0x2d0] sm:$0xff]  ;;  %v774_v5 = vld [vmem:[%s2247_s5 + $0x340] sm:$0xff]  ;;  %v775_v20 = vld [vmem:[%s2247_s5 + $0x348] sm:$0xff]  ;;  %v1579_v8 = vmov 0.0|0.0  }
 0x122   :  { %v1565_v25 = vpop.eup %1564  ;;  %1470 = vmatprep.subr.bf16.mxu0 %v1469_v27  ;;  %v1485_v63 = vpack.c.bf16 %v761_v14, %v760_v18  ;;  %v762_v29 = vld [vmem:[%s2247_s5 + $0x2e0] sm:$0xff]  ;;  %v793_v53 = vld [vmem:[%s2247_s5 + $0x3d8] sm:$0xff]  ;;  %v779_v44 = vld [vmem:[%s2247_s5 + $0x368] sm:$0xff] }
 0x123   :  { %v661_v40 = vadd.f32 1.0, %v1565_v25  ;;  %939 = vmatprep.mubr.f32.mxu1 %v665_v33  ;;  %v644_v27 = vmul.f32 0.70710677, %v2111_v2  ;;  %v747_v25 = vld [vmem:[%s2247_s5 + $0x268] sm:$0xff]  ;;  %v1489_v11 = vpack.c.bf16 %v763_v57, %v762_v29  ;;  %v1517_v56 = vpack.c.bf16 %v793_v53, %v792_v30  ;;  %v776_v33 = vld [vmem:[%s2247_s5 + $0x350] sm:$0xff]  ;;  %v797_v48 = vld [vmem:[%s2247_s5 + $0x3f8] sm:$0xff] }
 0x124   :  { %940 = vmatmul.mubr.f32.vlgmr.msra.gmra.mrb[6].mxu1 %v664_v37  ;;  %v765_v37 = vld [vmem:[%s2247_s5 + $0x2f8] sm:$0xff]  ;;  %v1519_v47 = vpack.c.bf16 %v777_v55, %v776_v33  ;;  %v1523_v50 = vpack.c.bf16 %v779_v44, %v778_v43  ;;  %v1240_v14 = vld [vmem:[%s2252_s6] ss:$0 sm:$0xff] }
 0x125   :  { %v669_v17 = vmul.f32 %v661_v40, %v637_v31  ;;  %1472 = vmatpush3.bf16.msra.mxu0 %v1471_v54  ;;  %1500 = vmatpush3.bf16.msra.mxu1 %v1499_v6  ;;  %v1487_v54 = vpack.c.bf16 %v745_v19, %v744_v26  ;;  %v1515_v6 = vpack.c.bf16 %v775_v20, %v774_v5  ;;  %1568 = verf.f32 %v644_v27  ;;  %v795_v31 = vld [vmem:[%s2247_s5 + $0x3e8] sm:$0xff]  ;;  %v781_v22 = vld [vmem:[%s2247_s5 + $0x378] sm:$0xff]  ;;  %v1242_v44 = vld [vmem:[%s2254_s8] ss:$0 sm:$0xff] }
 0x126   :  { %1474 = vmatprep.subr.bf16.mxu0 %v1473_v32  ;;  %1502 = vmatprep.subr.bf16.mxu1 %v1501_v38  ;;  %v746_v32 = vld [vmem:[%s2247_s5 + $0x260] sm:$0xff]  ;;  %v1493_v41 = vpack.c.bf16 %v765_v37, %v764_v36 }
 0x127   :  { %1079 = vmatprep.mubr.f32.mxu1 %v669_v17  ;;  %v794_v38 = vld [vmem:[%s2247_s5 + $0x3e0] sm:$0xff]  ;;  %v1491_v40 = vpack.c.bf16 %v747_v25, %v746_v32  ;;  %v1567_v17 = vpop.eup %1566 }
 0x128   :  { %v1521_v42 = vpack.c.bf16 %v795_v31, %v794_v38  ;;  %v658_v9 = vadd.f32 1.0, %v1567_v17 }
 0x129   :  { %1476 = vmatpush3.bf16.msra.mxu0 %v1475_v45  ;;  %1504 = vmatpush3.bf16.msra.mxu1 %v1503_v52  ;;  %v796_v45 = vld [vmem:[%s2247_s5 + $0x3f0] sm:$0xff]  ;;  %v1495_v52 = vpack.c.bf16 %v749_v60, %v748_v35  ;;  %v1241_v60 = vld [vmem:[%s2253_s7] ss:$0 sm:$0xff] }
 0x12a   :  { %1478 = vmatprep.subr.bf16.mxu0 %v1477_v4  ;;  %1506 = vmatprep.subr.bf16.mxu1 %v1505_v62  ;;  %v1525_v4 = vpack.c.bf16 %v797_v48, %v796_v45  ;;  %v780_v62 = vld [vmem:[%s2247_s5 + $0x370] sm:$0xff]  ;;  %v666_v0 = vmul.f32 %v658_v9, %v634_v59 }
 0x12b   :  { %v1527_v61 = vpack.c.bf16 %v781_v22, %v780_v62  ;;  %v1243_v62 = vld [vmem:[%s2255_s10] ss:$0 sm:$0xff] }
 0x12d   :  { %1480 = vmatpush3.bf16.msra.mxu0 %v1479_v34  ;;  %1508 = vmatpush3.bf16.msra.mxu1 %v1507_v7  ;;  %v636_v34 = vmul.f32 0.5, %v2111_v2  ;;  %v1530_v2 = vpack.c.bf16 %v1129_v46, %v1128_v10  ;;  %v1213_v10 = vand.u32 127, %v49_v49 }
 0x12e   :  { %1482 = vmatprep.subr.bf16.mxu0 %v1481_v13  ;;  %1510 = vmatprep.subr.bf16.mxu1 %v1509_v39  ;;  %v1131_v13 = vld [vmem:[%s2251_s9 + $0x18] sm:$0xff] }
 0x12f   :  { %v1569_v58 = vpop.eup %1568  ;;  %v1533_v39 = vpack.c.bf16 %v1131_v13, %v1130_v12  ;;  %vm1228_vm4 = vcmp.ge.s32.totalorder %v1213_v10, 32 }
 0x130   :  { %v660_v1 = vadd.f32 1.0, %v1569_v58 }
 0x131   :  { %1484 = vmatpush3.bf16.msra.mxu0 %v1483_v23  ;;  %1512 = vmatpush3.bf16.msra.mxu1 %v1511_v24 }
 0x132   :  { %1486 = vmatprep.subr.bf16.mxu0 %v1485_v63  ;;  %1514 = vmatprep.subr.bf16.mxu1 %v1513_v28  ;;  %v668_v7 = vmul.f32 %v660_v1, %v636_v34 }
 0x135   :  { %1488 = vmatpush3.bf16.msra.mxu0 %v1487_v54  ;;  %1516 = vmatpush3.bf16.msra.mxu1 %v1515_v6 }
 0x136   :  { %1490 = vmatprep.subr.bf16.mxu0 %v1489_v11  ;;  %1518 = vmatprep.subr.bf16.mxu1 %v1517_v56 }
 0x139   :  { %1492 = vmatpush3.bf16.msra.mxu0 %v1491_v40  ;;  %1520 = vmatpush3.bf16.msra.mxu1 %v1519_v47 }
 0x13a   :  { %1494 = vmatprep.subr.bf16.mxu0 %v1493_v41  ;;  %1522 = vmatprep.subr.bf16.mxu1 %v1521_v42 }
 0x13d   :  { %1496 = vmatpush3.bf16.msra.mxu0 %v1495_v52  ;;  %1524 = vmatpush3.bf16.msra.mxu1 %v1523_v50 }
 0x13e   :  { %1526 = vmatprep.subr.bf16.mxu1 %v1525_v4  ;;  %1529 = vmatprep.subr.bf16.mxu0 %v1579_v8 }
 0x140   :  { %1010 = vmatmul.mubr.f32.vlgmr.msra.gmra.mrb[4].mxu0 %v666_v0 }
 0x141   :  { %1528 = vmatpush3.bf16.msra.mxu1 %v1527_v61  ;;  %1398 = vmatprep.mubr.msk.f32.mxu0 %vm1580_vm1, %v1578_v3 }
 0x142   :  { %1531 = vmatpush3.bf16.msra.mxu0 %v1530_v2 }
 0x143   :  { %1532 = vmatprep.subr.bf16.mxu0 %v1579_v8 }
 0x144   :  { %1080 = vmatmul.mubr.f32.vlgmr.msra.gmra.mrb[8].mxu1 %v668_v7 }
 0x146   :  { %1534 = vmatpush3.bf16.msra.mxu0 %v1533_v39 }
 0x1f3   :  { %v1277_v15 = vpop.f32.mrb[2].mxu0 }
 0x1f4   :  { %v1278_v16 = vpop.f32.mrb[3].mxu0 }
 0x1f5   :  { %v1279_v18 = vadd.f32 %v1278_v16, %v1277_v15 }
 0x1f7   :  { %v1312_v51 = vpop.f32.mrb[6].mxu1  ;;  %v872_v23 = vadd.f32 %v1279_v18, %v1240_v14 }
 0x1f8   :  { %v1313_v21 = vpop.f32.mrb[7].mxu1 }
 0x1f9   :  { %v1314_v3 = vadd.f32 %v1313_v21, %v1312_v51 }
 0x1fb   :  { %v942_v24 = vadd.f32 %v1314_v3, %v872_v23 }
 0x213   :  { %v1347_v26 = vpop.f32.mrb[4].mxu0 }
 0x214   :  { %v1348_v19 = vpop.f32.mrb[5].mxu0 }
 0x215   :  { %v1349_v27 = vadd.f32 %v1348_v19, %v1347_v26 }
 0x217   :  { %v1012_v63 = vadd.f32 %v1349_v27, %v942_v24  ;;  %v1382_v28 = vpop.f32.mrb[8].mxu1 }
 0x218   :  { %v1383_v5 = vpop.f32.mrb[9].mxu1 }
 0x219   :  { %v1384_v20 = vadd.f32 %v1383_v5, %v1382_v28 }
 0x21b   :  { %v1082_v29 = vadd.f32 %v1384_v20, %v1012_v63 }
 0x21d   :  { %v1088_v57 = vsel %vm1087_vm2, %v1082_v29, 0.0 }
 0x21e   :  { %v1089_v30 = vrot.slane %v1088_v57, 4 }
 0x220   :  { %v1090_v53 = vadd.f32 %v1089_v30, %v1088_v57 }
 0x222   :  { %v1091_v54 = vrot.slane %v1090_v53, 2 }
 0x224   :  { %v1092_v6 = vadd.f32 %v1091_v54, %v1090_v53 }
 0x226   :  { %v1093_v32 = vrot.slane %v1092_v6, 1 }
 0x228   :  { %v1094_v25 = vadd.f32 %v1093_v32, %v1092_v6 }
 0x22a   :  { %v1095_v11 = vmul.f32 0.125, %v1094_v25 }
 0x22c   :  { %v1096_v56 = vsub.f32 %v1082_v29, %v1095_v11 }
 0x22e   :  { %v1097_v33 = vmul.f32 %v1096_v56, %v1096_v56 }
 0x230   :  { %v1098_v55 = vsel %vm1087_vm2, %v1097_v33, 0.0 }
 0x231   :  { %v1099_v36 = vrot.slane %v1098_v55, 4 }
 0x233   :  { %v1100_v37 = vadd.f32 %v1099_v36, %v1098_v55 }
 0x235   :  { %v1101_v38 = vrot.slane %v1100_v37, 2 }
 0x237   :  { %v1102_v31 = vadd.f32 %v1101_v38, %v1100_v37 }
 0x239   :  { %v1103_v40 = vrot.slane %v1102_v31, 1 }
 0x23b   :  { %v1104_v47 = vadd.f32 %v1103_v40, %v1102_v31 }
 0x23d   :  { %v1105_v35 = vmul.f32 0.125, %v1104_v47 }
 0x23f   :  { %v1106_v41 = vadd.f32 1e-05, %v1105_v35 }
 0x241   :  { %1570 = vrsqrt.f32 %v1106_v41 }
 0x24b   :  { %v1571_v42 = vpop.eup %1570 }
 0x24c   :  { %v1108_v43 = vmul.f32 %v1571_v42, %v1096_v56 }
 0x24e   :  { %v1115_v17 = vmul.f32 %v1241_v60, %v1108_v43 }
 0x250   :  { %v1122_v45 = vadd.f32 %v1242_v44, %v1115_v17 }
 0x252   :  { %v1124_v48 = vmul.f32 0.70710677, %v1122_v45  ;;  %v1123_v50 = vmul.f32 0.5, %v1122_v45 }
 0x254   :  { %1572 = verf.f32 %v1124_v48 }
 0x25e   :  { %v1573_v52 = vpop.eup %1572 }
 0x25f   :  { %v1126_v9 = vadd.f32 1.0, %v1573_v52 }
 0x261   :  { %v1127_v4 = vmul.f32 %v1126_v9, %v1123_v50 }
 0x263   :  { %1399 = vmatmul.mubr.msk.f32.vlgmr.msra.gmra.mrb[6].mxu0 %vm1087_vm2, %v1127_v4 }
 0x336   :  { %v1208_v22 = vpop.f32.mrb[6].mxu0 }
 0x337   :  { %v1209_v58 = vadd.f32 %v1243_v62, %v1208_v22  ;;  %v1400_v59 = vpop.f32.mrb[7].mxu0 }
 0x339   :  { %v1215_v61 = vmin.f32 %v1209_v58, 20.0  ;;  %vm1214_vm5 = vcmp.gt.f32.partialorder %v1209_v58, 20.0 }
 0x33b   :  { %v1216_v0 = vmul.f32 1.442695, %v1215_v61 }
 0x33d   :  { %1574 = vpow2.f32 %v1216_v0 }
 0x347   :  { %v1575_v1 = vpop.eup %1574 }
 0x348   :  { %v1218_v34 = vadd.f32 1.0, %v1575_v1  ;;  %v1221_v7 = vmul.f32 -0.5, %v1575_v1  ;;  %v1224_v46 = vand.u32 2147483647, %v1575_v1 }
 0x34a   :  { %1576 = vlog2.f32 %v1218_v34  ;;  %v1222_v8 = vadd.f32 1.0, %v1221_v7  ;;  %vm1225_vm3 = vcmp.lt.f32.partialorder %v1224_v46, 0.0004427343 }
 0x34c   :  { %v1223_v13 = vmul.f32 %v1575_v1, %v1222_v8 }
 0x354   :  { %v1577_v12 = vpop.eup %1576 }
 0x355   :  { %v1220_v2 = vmul.f32 0.6931472, %v1577_v12 }
 0x357   :  { %v1226_v39 = vsel %vm1225_vm3, %v1223_v13, %v1220_v2 }
 0x358   :  { %v1227_v15 = vsel %vm1214_vm5, %v1209_v58, %v1226_v39 }
 0x359   :  { %v1229_v16 = vsel %vm1228_vm4, %v1227_v15, %v1209_v58 }
 0x35a   :  { %1231 = vst.msk [vmem:[%s2256_s11] sm:$0xff] %vm1230_vm6, %v1229_v16 }

</bundles_post_ra>
